<compile_context>
chip_gen: v7x
topology: tpu7x:2x2x1
jax: 0.10.0
libtpu: 0.0.40
codegen_flags: <defaults>
</compile_context>

<pallas_src>
import functools

import jax
import jax.numpy as jnp
from jax import lax
from jax.experimental import pallas as pl
from jax.experimental.pallas import tpu as pltpu

LANES = 128
SUBLANES = 8

# Padding values whose focal loss is exactly 0 in float32:
#   b = log1p(exp(-40)) ~ 4.25e-18, exp(-b) rounds to 1.0, so (1-pt) == 0.
_PAD_LOGIT = 40.0
_PAD_TARGET = 1.0


def _cdiv(a, b):
    return (a + b - 1) // b


def _round_up(x, m):
    return _cdiv(x, m) * m


def _focal_kernel(p_ref, t_ref, out_ref, acc_ref, *, alpha, gamma):
    i = pl.program_id(1)  # inner (reduction) axis

    @pl.when(i == 0)
    def _():
        acc_ref[...] = jnp.zeros_like(acc_ref)

    p = p_ref[...].astype(jnp.float32)
    t = t_ref[...].astype(jnp.float32)

    # Numerically stable BCE-with-logits (matches torch semantics):
    #   b = max(p, 0) - p*t + log1p(exp(-|p|))
    b = jnp.maximum(p, 0.0) - p * t + jnp.log1p(jnp.exp(-jnp.abs(p)))
    pt = jnp.exp(-b)
    om = 1.0 - pt

    if float(gamma).is_integer():
        g = int(gamma)
        if g == 2:
            w = om * om
        else:
            w = lax.integer_pow(om, g)
    else:
        # Guard against tiny negative rounding before the float pow.
        w = jnp.maximum(om, 0.0) ** gamma

    fl = alpha * w * b

    # Fold (block_rows, 128) -> (block_rows/8, 8, 128) and add over the leading
    # axis: pure VPU adds into an (8,128) vector accumulator.
    acc_ref[...] += jnp.sum(fl.reshape(-1, SUBLANES, LANES), axis=0)

    @pl.when(i == pl.num_programs(1) - 1)
    def _():
        out_ref[...] = acc_ref[...]


def focal_loss(p, t, alpha=0.8, gamma=2.0, *, block_rows=2048, n_outer=2):
    assert p.shape == t.shape
    n = int(p.size)

    # Lane-dense layout: rows of 128 lanes, sublane-aligned to 8.
    rows_needed = _round_up(_cdiv(n, LANES), SUBLANES)
    block_rows_eff = min(_round_up(block_rows, SUBLANES), rows_needed)
    n_blocks = _cdiv(rows_needed, block_rows_eff)
    n_outer_eff = max(1, min(n_outer, n_blocks))
    n_inner = _cdiv(n_blocks, n_outer_eff)
    rows_padded = n_outer_eff * n_inner * block_rows_eff
    n_pad = rows_padded * LANES

    p_flat = p.reshape(-1)
    t_flat = t.reshape(-1)
    pad = n_pad - n
    if pad:
        # Pad with (logit=+40, target=1): contributes exactly 0 to the sum, so
        # no in-kernel mask is needed. Native dtype is kept (no f32 upcast in
        # the wrapper; the kernel casts per-block).
        p_flat = jnp.pad(p_flat, (0, pad), constant_values=_PAD_LOGIT)
        t_flat = jnp.pad(t_flat, (0, pad), constant_values=_PAD_TARGET)
    p2 = p_flat.reshape(rows_padded, LANES)
    t2 = t_flat.reshape(rows_padded, LANES)

    kernel = functools.partial(_focal_kernel, alpha=float(alpha), gamma=float(gamma))

    # Double-buffered input VMEM budget + headroom, capped for v7x (64 MiB phys).
    blk_bytes = block_rows_eff * LANES * (p2.dtype.itemsize + t2.dtype.itemsize)
    vmem_limit = int(min(48 << 20, max(16 << 20, 2 * blk_bytes + (4 << 20))))

    partial_sums = pl.pallas_call(
        kernel,
        out_shape=jax.ShapeDtypeStruct((n_outer_eff * SUBLANES, LANES), jnp.float32),
        grid_spec=pltpu.PrefetchScalarGridSpec(
            num_scalar_prefetch=0,
            grid=(n_outer_eff, n_inner),
            in_specs=[
                pl.BlockSpec((block_rows_eff, LANES),
                             lambda o, i: (o * n_inner + i, 0)),
                pl.BlockSpec((block_rows_eff, LANES),
                             lambda o, i: (o * n_inner + i, 0)),
            ],
            out_specs=pl.BlockSpec((SUBLANES, LANES), lambda o, i: (o, 0)),
            scratch_shapes=[pltpu.VMEM((SUBLANES, LANES), jnp.float32)],
        ),
        compiler_params=pltpu.CompilerParams(
            dimension_semantics=("parallel", "arbitrary"),
            vmem_limit_bytes=vmem_limit,
        ),
    )(p2, t2)

    # Tiny final reduce + mean in the wrapper (lane-dense output, cheap).
    return jnp.sum(partial_sums) / jnp.float32(n)


def focal_loss_ref(p, t, alpha=0.8, gamma=2.0):
    p = p.astype(jnp.float32)
    t = t.astype(jnp.float32)
    b = jnp.maximum(p, 0.0) - p * t + jnp.log1p(jnp.exp(-jnp.abs(p)))
    pt = jnp.exp(-b)
    return jnp.mean(alpha * (1.0 - pt) ** gamma * b)


if __name__ == "__main__":
    key = jax.random.PRNGKey(0)
    kp, kt = jax.random.split(key)

    # NCHW logits and binary targets, small shapes (exactly tile-aligned).
    B, C, H, W = 2, 4, 16, 16
    p = jax.random.normal(kp, (B, C, H, W), dtype=jnp.float32) * 2.0
    t = (jax.random.uniform(kt, (B, C, H, W)) > 0.5).astype(jnp.float32)

    loss = jax.block_until_ready(focal_loss(p, t))
    ref = jax.block_until_ready(focal_loss_ref(p, t))
    assert jnp.allclose(loss, ref, rtol=1e-5, atol=1e-6), (loss, ref)

    # Ragged shape exercising the zero-contribution padding and a true
    # (parallel, arbitrary) 2-D grid with multiple inner reduction steps.
    kp2, kt2 = jax.random.split(kt)
    pr = jax.random.normal(kp2, (2, 3, 37, 53), dtype=jnp.float32) * 2.0
    tr = (jax.random.uniform(kt2, (2, 3, 37, 53)) > 0.5).astype(jnp.float32)
    loss2 = jax.block_until_ready(focal_loss(pr, tr, block_rows=16, n_outer=2))
    ref2 = jax.block_until_ready(focal_loss_ref(pr, tr))
    assert jnp.allclose(loss2, ref2, rtol=1e-5, atol=1e-6), (loss2, ref2)

    print("KERNEL_OK")
</pallas_src>

<mosaic_0001>
module attributes {stable_mosaic.version = 11 : i64} {
  func.func @_focal_kernel(%arg0: i32, %arg1: i32, %arg2: memref<16x128xf32, #tpu.memory_space<vmem>>, %arg3: memref<16x128xf32, #tpu.memory_space<vmem>>, %arg4: memref<8x128xf32, #tpu.memory_space<vmem>>, %arg5: memref<8x128xf32, #tpu.memory_space<vmem>>) attributes {dimension_semantics = [#tpu.dimension_semantics<parallel>, #tpu.dimension_semantics<arbitrary>], iteration_bounds = array<i64: 1, 1>, scalar_prefetch = 0 : i64, scratch_operands = 1 : i64, tpu.core_type = #tpu.core_type<tc>, window_params = [{transform_indices = @transform_0, window_bounds = array<i64: 16, 128>}, {transform_indices = @transform_1, window_bounds = array<i64: 16, 128>}, {transform_indices = @transform_2, window_bounds = array<i64: 8, 128>}]} {
    %c0_i32 = arith.constant 0 : i32
    %0 = arith.cmpi eq, %arg1, %c0_i32 : i32
    %1 = arith.extui %0 : i1 to i32
    %c0_i32_0 = arith.constant 0 : i32
    %2 = arith.cmpi ne, %1, %c0_i32_0 : i32
    scf.if %2 {
      %cst_15 = arith.constant 0.000000e+00 : f32
      %32 = vector.broadcast %cst_15 : f32 to vector<8x128xf32>
      %c0_16 = arith.constant 0 : index
      %c0_17 = arith.constant 0 : index
      %33 = vector.load %arg5[%c0_16, %c0_17] : memref<8x128xf32, #tpu.memory_space<vmem>>, vector<8x128xf32>
      tpu.vector_store %arg5[%c0_16, %c0_17], %32 {strides = array<i32>} : memref<8x128xf32, #tpu.memory_space<vmem>>, vector<8x128xf32>,
    } else {
    }
    %c0 = arith.constant 0 : index
    %c0_1 = arith.constant 0 : index
    %3 = vector.load %arg2[%c0, %c0_1] : memref<16x128xf32, #tpu.memory_space<vmem>>, vector<16x128xf32>
    %c0_2 = arith.constant 0 : index
    %c0_3 = arith.constant 0 : index
    %4 = vector.load %arg3[%c0_2, %c0_3] : memref<16x128xf32, #tpu.memory_space<vmem>>, vector<16x128xf32>
    %cst = arith.constant 0.000000e+00 : f32
    %5 = vector.broadcast %cst : f32 to vector<16x128xf32>
    %6 = arith.maximumf %3, %5 : vector<16x128xf32>
    %7 = arith.mulf %3, %4 : vector<16x128xf32>
    %8 = arith.subf %6, %7 : vector<16x128xf32>
    %9 = math.absf %3 : vector<16x128xf32>
    %cst_4 = arith.constant 0.000000e+00 : f32
    %10 = vector.broadcast %cst_4 : f32 to vector<16x128xf32>
    %11 = arith.subf %10, %9 : vector<16x128xf32>
    %12 = math.exp %11 : vector<16x128xf32>
    %13 = math.log1p %12 : vector<16x128xf32>
    %14 = arith.addf %8, %13 : vector<16x128xf32>
    %cst_5 = arith.constant 0.000000e+00 : f32
    %15 = vector.broadcast %cst_5 : f32 to vector<16x128xf32>
    %16 = arith.subf %15, %14 : vector<16x128xf32>
    %17 = math.exp %16 : vector<16x128xf32>
    %cst_6 = arith.constant 1.000000e+00 : f32
    %18 = vector.broadcast %cst_6 : f32 to vector<16x128xf32>
    %19 = arith.subf %18, %17 : vector<16x128xf32>
    %20 = arith.mulf %19, %19 : vector<16x128xf32>
    %cst_7 = arith.constant 8.000000e-01 : f32
    %21 = vector.broadcast %cst_7 : f32 to vector<16x128xf32>
    %22 = arith.mulf %21, %20 : vector<16x128xf32>
    %23 = arith.mulf %22, %14 : vector<16x128xf32>
    %c0_8 = arith.constant 0 : index
    %c0_9 = arith.constant 0 : index
    %24 = vector.load %arg5[%c0_8, %c0_9] : memref<8x128xf32, #tpu.memory_space<vmem>>, vector<8x128xf32>
    %25 = vector.shape_cast %23 : vector<16x128xf32> to vector<2x8x128xf32>
    %cst_10 = arith.constant dense<0.000000e+00> : vector<8x128xf32>
    %26 = vector.multi_reduction <add>, %25, %cst_10 [0] : vector<2x8x128xf32> to vector<8x128xf32>
    %27 = arith.addf %24, %26 : vector<8x128xf32>
    %c0_11 = arith.constant 0 : index
    %c0_12 = arith.constant 0 : index
    %28 = vector.load %arg5[%c0_11, %c0_12] : memref<8x128xf32, #tpu.memory_space<vmem>>, vector<8x128xf32>
    tpu.vector_store %arg5[%c0_11, %c0_12], %27 {strides = array<i32>} : memref<8x128xf32, #tpu.memory_space<vmem>>, vector<8x128xf32>,
    %c0_i32_13 = arith.constant 0 : i32
    %29 = arith.cmpi eq, %arg1, %c0_i32_13 : i32
    %30 = arith.extui %29 : i1 to i32
    %c0_i32_14 = arith.constant 0 : i32
    %31 = arith.cmpi ne, %30, %c0_i32_14 : i32
    scf.if %31 {
      %c0_15 = arith.constant 0 : index
      %c0_16 = arith.constant 0 : index
      %32 = vector.load %arg5[%c0_15, %c0_16] : memref<8x128xf32, #tpu.memory_space<vmem>>, vector<8x128xf32>
      %c0_17 = arith.constant 0 : index
      %c0_18 = arith.constant 0 : index
      %33 = vector.load %arg4[%c0_17, %c0_18] : memref<8x128xf32, #tpu.memory_space<vmem>>, vector<8x128xf32>
      tpu.vector_store %arg4[%c0_17, %c0_18], %32 {strides = array<i32>} : memref<8x128xf32, #tpu.memory_space<vmem>>, vector<8x128xf32>,
    } else {
    }
    return
  }
  func.func @transform_0(%arg0: i32, %arg1: i32) -> (i32, i32) {
    %c1_i32 = arith.constant 1 : i32
    %0 = arith.muli %arg0, %c1_i32 : i32
    %1 = arith.addi %0, %arg1 : i32
    %c0_i32 = arith.constant 0 : i32
    %c0_i32_0 = arith.constant 0 : i32
    return %1, %c0_i32 : i32, i32
  }
  func.func @transform_1(%arg0: i32, %arg1: i32) -> (i32, i32) {
    %c1_i32 = arith.constant 1 : i32
    %0 = arith.muli %arg0, %c1_i32 : i32
    %1 = arith.addi %0, %arg1 : i32
    %c0_i32 = arith.constant 0 : i32
    %c0_i32_0 = arith.constant 0 : i32
    return %1, %c0_i32 : i32, i32
  }
  func.func @transform_2(%arg0: i32, %arg1: i32) -> (i32, i32) {
    %c0_i32 = arith.constant 0 : i32
    %c0_i32_0 = arith.constant 0 : i32
    return %arg0, %c0_i32 : i32, i32
  }
}

</mosaic_0001>

<bundles_post_ra>
// kernel: tpu_custom_call.1
= control target key start
LH: loop header
LB: loop body
LE: loop exit
PB: predicated region body
PF: predicated region fallthrough
CT: control target
= control target key end

     0   :  { %7 = vsyncpa [#allocation4], 0  ;;  %s279_s0 = inlined_call_operand.hbm [shape: f32[16,128], index: 0, kind: input, shape index: {}]   ;;  %s280_s1 = inlined_call_operand.hbm [shape: f32[16,128], index: 1, kind: input, shape index: {}]   ;;  %s281_s2 = inlined_call_operand.hbm [shape: f32[8,128], index: 2, kind: output, shape index: {}]  }
   0x1   :  { %8 = vsyncpa [#allocation7], 0 }
   0x2   :  { %9 = vsyncpa [#allocation5], 0  ;;  %s223_s9 = smov [#allocation3]   ;;  %s151_s13 = scalar_lea.hbm %s279_s0, 256 }
   0x3   :  { %s19_s10 = sshll.u32 %s223_s9, 4  ;;  %p152_p0 = scmp.ne.s32.totalorder %s279_s0, %s151_s13  ;;  %s20_s10 = int_to_ptr.vmem [resolvable:$true] %s19_s10 }
   0x4   :  { %p155_p1 = scmp.lt.u32.totalorder %s151_s13, %s279_s0 }
   0x6   :  { %p157_p2 = pnand %p155_p1, %p152_p0 }
   0x8   :  { %160 = shalt.err (!%p157_p2)
}
   0x9   :  { %s161_s18 = scalar_lea.vmem %s20_s10, 256  ;;  %p166_p4 = scmp.lt.s32.totalorder %s20_s10, %s20_s10 }
   0xa   :  { %p162_p3 = scmp.ne.s32.totalorder %s20_s10, %s161_s18  ;;  %p167_p5 = scmp.lt.s32.totalorder %s161_s18, %s161_s18 }
   0xc   :  { %p168_p6 = por %p167_p5, %p166_p4 }
   0xe   :  { %p169_p7 = pnand %p168_p6, %p162_p3 }
  0x10   :  { %172 = shalt.err (!%p169_p7)
}
  0x11   :  { %s224_s19 = smov 128   ;;  %s225_s20 = smov 8  }
  0x12   :  { %25 = dma.hbm_to_vmem [thread:$0]  %s279_s0, 256, %s20_s10, [#allocation4], %s224_s19, %s224_s19, %s225_s20  }
  0x13   :  { %s226_s23 = smov [#allocation6]   ;;  %s173_s27 = scalar_lea.hbm %s280_s1, 256 }
  0x14   :  { %s35_s24 = sshll.u32 %s226_s23, 4  ;;  %p174_p8 = scmp.ne.s32.totalorder %s280_s1, %s173_s27  ;;  %s36_s24 = int_to_ptr.vmem [resolvable:$true] %s35_s24 }
  0x15   :  { %p177_p9 = scmp.lt.u32.totalorder %s173_s27, %s280_s1 }
  0x17   :  { %p179_p10 = pnand %p177_p9, %p174_p8 }
  0x19   :  { %182 = shalt.err (!%p179_p10)
}
  0x1a   :  { %s183_s4 = scalar_lea.vmem %s36_s24, 256  ;;  %p188_p12 = scmp.lt.s32.totalorder %s36_s24, %s36_s24 }
  0x1b   :  { %p184_p11 = scmp.ne.s32.totalorder %s36_s24, %s183_s4  ;;  %p189_p13 = scmp.lt.s32.totalorder %s183_s4, %s183_s4 }
  0x1d   :  { %p190_p0 = por %p189_p13, %p188_p12 }
  0x1f   :  { %p191_p1 = pnand %p190_p0, %p184_p11 }
  0x21   :  { %194 = shalt.err (!%p191_p1)
}
  0x22   :  { %41 = dma.hbm_to_vmem [thread:$0]  %s280_s1, 256, %s36_s24, [#allocation7], %s224_s19, %s224_s19, %s225_s20  }
  0x23   :  { %217 = dma.done.wait [#allocation4], 256  }
  0x24   :  { %218 = vsyncadd [#allocation4], 4294967040 }
  0x25   :  { %219 = dma.done.wait [#allocation7], 256  }
  0x26   :  { %220 = vsyncadd [#allocation7], 4294967040  ;;  %v57_v0 = vld [vmem:[#allocation3] sm:$0xff]  ;;  %v58_v1 = vld [vmem:[#allocation3 + $0x8] sm:$0xff]  ;;  %s227_s1 = smov [#allocation8]  }
  0x27   :  { %v67_v2 = vand.u32 2147483647, %v57_v0  ;;  %v68_v3 = vand.u32 2147483647, %v58_v1  ;;  %v59_v14 = vld [vmem:[#allocation6] sm:$0xff]  ;;  %v60_v15 = vld [vmem:[#allocation6 + $0x8] sm:$0xff] }
  0x28   :  { %v61_v17 = vmax.f32 %v57_v0, 0.0  ;;  %v63_v18 = vmul.f32 %v59_v14, %v57_v0  ;;  %v62_v21 = vmax.f32 %v58_v1, 0.0  ;;  %v64_v22 = vmul.f32 %v60_v15, %v58_v1  ;;  %s124_s6 = sshll.u32 %s227_s1, 4  ;;  %s125_s6 = int_to_ptr.vmem [resolvable:$true] %s124_s6 }
  0x29   :  { %v69_v4 = vsub.f32 0.0, %v67_v2  ;;  %v70_v5 = vsub.f32 0.0, %v68_v3  ;;  %s195_s7 = scalar_lea.vmem %s125_s6, 128  ;;  %p200_p3 = scmp.lt.s32.totalorder %s125_s6, %s125_s6 }
  0x2a   :  { %v65_v26 = vsub.f32 %v61_v17, %v63_v18  ;;  %v66_v29 = vsub.f32 %v62_v21, %v64_v22  ;;  %p196_p2 = scmp.ne.s32.totalorder %s125_s6, %s195_s7  ;;  %p201_p4 = scmp.lt.s32.totalorder %s195_s7, %s195_s7 }
  0x2b   :  { %v71_v6 = vmul.f32 1.442695, %v69_v4  ;;  %v73_v7 = vmul.f32 1.442695, %v70_v5 }
  0x2c   :  { %p202_p5 = por %p201_p4, %p200_p3 }
  0x2d   :  { %139 = vpow2.f32 %v71_v6 }
  0x2e   :  { %141 = vpow2.f32 %v73_v7  ;;  %p203_p6 = pnand %p202_p5, %p196_p2 }
  0x37   :  { %v140_v8 = vpop.eup %139 }
  0x38   :  { %v142_v9 = vpop.eup %141  ;;  %v75_v10 = vadd.f32 1.0, %v140_v8  ;;  %v78_v12 = vmul.f32 -0.5, %v140_v8  ;;  %v81_v19 = vand.u32 2147483647, %v140_v8 }
  0x39   :  { %v84_v11 = vadd.f32 1.0, %v142_v9  ;;  %v87_v13 = vmul.f32 -0.5, %v142_v9  ;;  %v90_v23 = vand.u32 2147483647, %v142_v9 }
  0x3a   :  { %143 = vlog2.f32 %v75_v10  ;;  %v79_v16 = vadd.f32 1.0, %v78_v12  ;;  %vm82_vm0 = vcmp.lt.f32.partialorder %v81_v19, 0.0004427343 }
  0x3b   :  { %145 = vlog2.f32 %v84_v11  ;;  %v88_v20 = vadd.f32 1.0, %v87_v13  ;;  %vm91_vm1 = vcmp.lt.f32.partialorder %v90_v23, 0.0004427343 }
  0x3c   :  { %v80_v24 = vmul.f32 %v140_v8, %v79_v16 }
  0x3d   :  { %v89_v27 = vmul.f32 %v142_v9, %v88_v20 }
  0x44   :  { %v144_v25 = vpop.eup %143 }
  0x45   :  { %v146_v28 = vpop.eup %145  ;;  %v77_v30 = vmul.f32 0.6931472, %v144_v25 }
  0x46   :  { %v86_v31 = vmul.f32 0.6931472, %v146_v28 }
  0x47   :  { %v83_v32 = vsel %vm82_vm0, %v80_v24, %v77_v30 }
  0x48   :  { %v92_v33 = vsel %vm91_vm1, %v89_v27, %v86_v31  ;;  %v93_v34 = vadd.f32 %v83_v32, %v65_v26 }
  0x49   :  { %v94_v35 = vadd.f32 %v92_v33, %v66_v29 }
  0x4a   :  { %v95_v36 = vsub.f32 0.0, %v93_v34 }
  0x4b   :  { %v96_v37 = vsub.f32 0.0, %v94_v35 }
  0x4c   :  { %v97_v38 = vmul.f32 1.442695, %v95_v36 }
  0x4d   :  { %v99_v39 = vmul.f32 1.442695, %v96_v37 }
  0x4e   :  { %147 = vpow2.f32 %v97_v38 }
  0x4f   :  { %149 = vpow2.f32 %v99_v39 }
  0x58   :  { %v148_v40 = vpop.eup %147 }
  0x59   :  { %v150_v41 = vpop.eup %149  ;;  %v101_v42 = vsub.f32 1.0, %v148_v40 }
  0x5a   :  { %v102_v43 = vsub.f32 1.0, %v150_v41 }
  0x5b   :  { %v103_v44 = vmul.f32 %v101_v42, %v101_v42 }
  0x5c   :  { %v104_v45 = vmul.f32 %v102_v43, %v102_v43 }
  0x5d   :  { %v105_v46 = vmul.f32 0.8, %v103_v44 }
  0x5e   :  { %v106_v47 = vmul.f32 0.8, %v104_v45 }
  0x5f   :  { %v107_v48 = vmul.f32 %v105_v46, %v93_v34 }
  0x60   :  { %v108_v49 = vmul.f32 %v106_v47, %v94_v35 }
  0x62   :  { %v110_v50 = vadd.f32 %v108_v49, %v107_v48 }
  0x64   :  { %117 = vst [vmem:[#allocation8] sm:$0xff] %v110_v50 }
  0x65   :  { %206 = shalt.err (!%p203_p6)
}
  0x66   :  { %s207_s10 = scalar_lea.hbm %s281_s2, 128 }
  0x67   :  { %p208_p7 = scmp.ne.s32.totalorder %s281_s2, %s207_s10  ;;  %p211_p8 = scmp.lt.u32.totalorder %s207_s10, %s281_s2 }
  0x69   :  { %p213_p9 = pnand %p211_p8, %p208_p7 }
  0x6b   :  { %216 = shalt.err (!%p213_p9)
}
  0x6c   :  { %127 = dma.vmem_to_hbm [thread:$0]  %s125_s6, 128, %s281_s2, [#allocation5]  }
  0x6d   :  { %221 = dma.done.wait [#allocation5], 128  }
  0x6e   :  { %222 = vsyncadd [#allocation5], 4294967168 }
  0x6f   :  { %131 = vsyncpa [#allocation4], 1 }
  0x70   :  { %132 = vsyncpa [#allocation7], 1 }
  0x71   :  { %133 = vsyncpa [#allocation5], 1 }

</bundles_post_ra>
